<compile_context>
chip_gen: v5e
topology: v5e:2x2
jax: 0.10.0
libtpu: 0.0.40
codegen_flags: <defaults>
</compile_context>

<pallas_src>
import jax
import jax.numpy as jnp
from jax import lax
from jax.experimental import pallas as pl
from jax.experimental.pallas import tpu as pltpu


# ---------------------------------------------------------------------------
# Eval-mode BatchNorm folding: y = s*x + t
# ---------------------------------------------------------------------------
def fold_bn(gamma, beta, mean, var, eps=1e-5):
    s = gamma / jnp.sqrt(var + eps)
    return s, beta - mean * s


# ---------------------------------------------------------------------------
# Pallas kernel: one (Bt, C, HWt) block per grid step.
# ---------------------------------------------------------------------------
def attention_kernel(x_ref, w1_ref, b1_ref, w2_ref, b2_ref, out_ref):
    def body(b, carry):
        # 1x1 conv (C -> C//8) on the MXU; BN scale/shift already folded into w1/b1.
        # Re-index x_ref here (don't hold the tile live across the kernel).
        h = jnp.dot(w1_ref[...], x_ref[b].astype(jnp.bfloat16),
                    preferred_element_type=jnp.float32) + b1_ref[...]        # (C8, HWt)
        h = jnp.maximum(h, 0.0)              # ReLU; Dropout2d(0.2) = identity in eval mode
        # 1x1 conv (C//8 -> 1): sublane reduction on the XLU, scalar bias from SMEM.
        logit = jnp.sum(h * w2_ref[...], axis=0, keepdims=True) + b2_ref[0, 0]  # (1, HWt)
        a = jax.nn.sigmoid(logit)
        # Re-weight input features: fresh lane-dense load of x, lane-dense store.
        out_ref[b] = x_ref[b] * a                                             # (C, HWt) f32
        return carry

    # Unrolled so the MXU pipeline stays fed across the Bt small (C8 x HWt) matmuls
    # and live ranges stay bounded per element.
    lax.fori_loop(0, x_ref.shape[0], body, 0, unroll=True)


# ---------------------------------------------------------------------------
# Tile-size selection (generation-aware VMEM caps, >= 2 grid steps for v7x)
# ---------------------------------------------------------------------------
def _choose_tiles(B, C, HW):
    itemsize = 4
    target_block_bytes = 1 << 20      # ~1 MiB input DMAs: near the HBM roofline
    max_block_bytes = 6 << 20         # 2x(in)+2x(out) double-buffered <= 24 MiB everywhere

    # Spatial (lane-axis) tiling only when a single batch element is already big.
    if C * HW * itemsize <= max_block_bytes or HW % 128 != 0:
        HWt = HW
    else:
        HWt = max(128, (max_block_bytes // (C * itemsize)) // 128 * 128)
    n_hw = pl.cdiv(HW, HWt)

    # Batch tiling: grow the block toward the target size ...
    per_elem = C * HWt * itemsize
    Bt = int(max(1, min(B, max(target_block_bytes // per_elem, 1))))
    # ... but keep >= 2 grid steps when B >= 2 (v7x has 2 TensorCores) ...
    while Bt > 1 and pl.cdiv(B, Bt) * n_hw < 2:
        Bt -= 1
    # ... and prefer a Bt that divides B (no ragged last block).
    while Bt > 1 and B % Bt != 0:
        Bt -= 1
    return Bt, HWt


def attention_layer(x, params):
    """x: (B, C, H, W) float32 NCHW.  Returns x * attention_map, same shape/layout."""
    B, C, H, W = x.shape
    C8 = C // 8
    HW = H * W

    # Fold eval-mode BN into the first 1x1 conv; cast matmul weight to bf16.
    s1, t1 = fold_bn(*params["bn"])
    w1f = (params["w1"] * s1[:, None]).astype(jnp.bfloat16)          # (C8, C)
    b1f = (params["b1"] * s1 + t1).reshape(C8, 1).astype(jnp.float32)
    w2c = params["w2"].reshape(C8, 1).astype(jnp.float32)            # column for sublane reduce
    b2 = params["b2"].reshape(1, 1).astype(jnp.float32)              # scalar -> SMEM

    Bt, HWt = _choose_tiles(B, C, HW)
    grid = (pl.cdiv(B, Bt), pl.cdiv(HW, HWt))

    # Raise the scoped-VMEM limit explicitly (v5e default is only 16 MiB); keep it
    # under ~48 MiB so it also fits v7x's 64 MiB physical VMEM per TensorCore.
    in_block_bytes = Bt * C * HWt * 4
    vmem_needed = 4 * in_block_bytes + w1f.size * 2 + (b1f.size + w2c.size) * 4 + (1 << 20)
    vmem_limit = int(min(max(vmem_needed, 32 << 20), 48 << 20))

    cost = pl.CostEstimate(
        flops=2 * B * C8 * C * HW + 4 * B * C8 * HW + B * C * HW,
        transcendentals=B * HW,
        bytes_accessed=2 * B * C * HW * 4 + w1f.size * 2 + (b1f.size + w2c.size + 1) * 4,
    )

    xf = x.reshape(B, C, HW)                                         # free reshape, no transpose
    out = pl.pallas_call(
        attention_kernel,
        out_shape=jax.ShapeDtypeStruct((B, C, HW), jnp.float32),
        grid=grid,
        in_specs=[
            pl.BlockSpec((Bt, C, HWt), lambda bi, hi: (bi, 0, hi)),  # features
            pl.BlockSpec((C8, C), lambda bi, hi: (0, 0)),            # folded conv1 weight (bf16)
            pl.BlockSpec((C8, 1), lambda bi, hi: (0, 0)),            # folded conv1/BN bias
            pl.BlockSpec((C8, 1), lambda bi, hi: (0, 0)),            # conv2 weight column
            pl.BlockSpec(memory_space=pltpu.MemorySpace.SMEM),       # conv2 bias (scalar)
        ],
        out_specs=pl.BlockSpec((Bt, C, HWt), lambda bi, hi: (bi, 0, hi)),
        compiler_params=pltpu.CompilerParams(
            dimension_semantics=("parallel", "parallel"),            # batch & HW steps independent
            vmem_limit_bytes=vmem_limit),
        cost_estimate=cost,
    )(xf, w1f, b1f, w2c, b2)
    return out.reshape(B, C, H, W)


# ---------------------------------------------------------------------------
# Deterministic parameter construction (mirrors the PyTorch layer's parameters)
# ---------------------------------------------------------------------------
def make_params(key, C):
    C8 = C // 8
    ks = jax.random.split(key, 8)
    w1 = (2.0 / C) ** 0.5 * jax.random.normal(ks[0], (C8, C), jnp.float32)   # Conv2d(C->C8, 1x1)
    b1 = 0.01 * jax.random.normal(ks[1], (C8,), jnp.float32)
    gamma = 1.0 + 0.1 * jax.random.normal(ks[2], (C8,), jnp.float32)         # BatchNorm2d(C8) running stats
    beta = 0.1 * jax.random.normal(ks[3], (C8,), jnp.float32)
    mean = 0.1 * jax.random.normal(ks[4], (C8,), jnp.float32)
    var = 1.0 + 0.1 * jax.random.uniform(ks[5], (C8,), jnp.float32)
    w2 = (2.0 / C8) ** 0.5 * jax.random.normal(ks[6], (C8,), jnp.float32)    # Conv2d(C8->1, 1x1)
    b2 = 0.01 * jax.random.normal(ks[7], (1,), jnp.float32)
    return {"w1": w1, "b1": b1, "bn": (gamma, beta, mean, var), "w2": w2, "b2": b2}


# ---------------------------------------------------------------------------
# Pure-JAX reference with the same precision strategy (bf16 MXU, f32 everywhere else)
# ---------------------------------------------------------------------------
def attention_layer_ref(x, params):
    B, C, H, W = x.shape
    s1, t1 = fold_bn(*params["bn"])
    w1f = (params["w1"] * s1[:, None]).astype(jnp.bfloat16)
    b1f = params["b1"] * s1 + t1
    xf = x.reshape(B, C, H * W)
    h = jnp.einsum("oc,bcn->bon", w1f, xf.astype(jnp.bfloat16),
                   preferred_element_type=jnp.float32) + b1f[None, :, None]
    h = jnp.maximum(h, 0.0)
    logit = jnp.einsum("o,bon->bn", params["w2"], h) + params["b2"][0]
    a = jax.nn.sigmoid(logit)[:, None, :]
    return (xf * a).reshape(B, C, H, W)


if __name__ == "__main__":
    key = jax.random.PRNGKey(0)
    k_x, k_p = jax.random.split(key)

    # Small deterministic input: batch=2, in_features=256 (so C//8=32), 16x16 spatial.
    B, C, H, W = 2, 256, 16, 16
    x = jax.random.normal(k_x, (B, C, H, W), jnp.float32)
    params = make_params(k_p, C)

    out = jax.jit(attention_layer)(x, params)
    jax.block_until_ready(out)

    ref = attention_layer_ref(x, params)
    assert out.shape == (B, C, H, W), out.shape
    assert bool(jnp.all(jnp.isfinite(out)))
    assert bool(jnp.allclose(out, ref, rtol=2e-2, atol=2e-2)), float(jnp.max(jnp.abs(out - ref)))
    print("KERNEL_OK")
</pallas_src>

<mosaic_0001>
module attributes {stable_mosaic.version = 11 : i64} {
  func.func @attention_kernel(%arg0: i32, %arg1: i32, %arg2: memref<1x256x256xf32, #tpu.memory_space<vmem>>, %arg3: memref<32x256xbf16, #tpu.memory_space<vmem>>, %arg4: memref<32x1xf32, #tpu.memory_space<vmem>>, %arg5: memref<32x1xf32, #tpu.memory_space<vmem>>, %arg6: memref<1x1xf32, #tpu.memory_space<smem>>, %arg7: memref<1x256x256xf32, #tpu.memory_space<vmem>>) attributes {dimension_semantics = [#tpu.dimension_semantics<parallel>, #tpu.dimension_semantics<parallel>], iteration_bounds = array<i64: 2, 1>, scalar_prefetch = 0 : i64, scratch_operands = 0 : i64, tpu.core_type = #tpu.core_type<tc>, window_params = [{transform_indices = @transform_0, window_bounds = array<i64: 1, 256, 256>}, {pipeline_mode = #tpu.pipeline_mode<synchronous>, transform_indices = @transform_1, window_bounds = array<i64: 32, 256>}, {pipeline_mode = #tpu.pipeline_mode<synchronous>, transform_indices = @transform_2, window_bounds = array<i64: 32, 1>}, {pipeline_mode = #tpu.pipeline_mode<synchronous>, transform_indices = @transform_3, window_bounds = array<i64: 32, 1>}, {transform_indices = @transform_4, window_bounds = array<i64: 1, 1>}, {transform_indices = @transform_5, window_bounds = array<i64: 1, 256, 256>}]} {
    %c0_i32 = arith.constant 0 : i32
    %c0 = arith.constant 0 : index
    %c0_0 = arith.constant 0 : index
    %0 = vector.load %arg3[%c0, %c0_0] : memref<32x256xbf16, #tpu.memory_space<vmem>>, vector<32x256xbf16>
    %1 = arith.index_cast %c0_i32 : i32 to index
    %c0_1 = arith.constant 0 : index
    %c0_2 = arith.constant 0 : index
    %2 = vector.load %arg2[%1, %c0_1, %c0_2] : memref<1x256x256xf32, #tpu.memory_space<vmem>>, vector<1x256x256xf32>
    %3 = vector.shape_cast %2 : vector<1x256x256xf32> to vector<256x256xf32>
    %4 = arith.truncf %3 : vector<256x256xf32> to vector<256x256xbf16>
    %cst = arith.constant dense<0.000000e+00> : vector<32x256xf32>
    %5 = tpu.matmul %0, %4, %cst {dimension_numbers = #tpu.dot_dimension_numbers<[1], [0], [0], [1], [0, 0, 1, 1], [], []>} : vector<32x256xbf16>, vector<256x256xbf16>, vector<32x256xf32> -> vector<32x256xf32>
    %c0_3 = arith.constant 0 : index
    %c0_4 = arith.constant 0 : index
    %6 = vector.load %arg4[%c0_3, %c0_4] : memref<32x1xf32, #tpu.memory_space<vmem>>, vector<32x1xf32>
    %7 = vector.broadcast %6 : vector<32x1xf32> to vector<32x256xf32>
    %8 = arith.addf %5, %7 : vector<32x256xf32>
    %cst_5 = arith.constant 0.000000e+00 : f32
    %9 = vector.broadcast %cst_5 : f32 to vector<32x256xf32>
    %10 = arith.maximumf %8, %9 : vector<32x256xf32>
    %c0_6 = arith.constant 0 : index
    %c0_7 = arith.constant 0 : index
    %11 = vector.load %arg5[%c0_6, %c0_7] : memref<32x1xf32, #tpu.memory_space<vmem>>, vector<32x1xf32>
    %12 = vector.broadcast %11 : vector<32x1xf32> to vector<32x256xf32>
    %13 = arith.mulf %10, %12 : vector<32x256xf32>
    %cst_8 = arith.constant dense<0.000000e+00> : vector<256xf32>
    %14 = vector.multi_reduction <add>, %13, %cst_8 [0] : vector<32x256xf32> to vector<256xf32>
    %15 = vector.shape_cast %14 : vector<256xf32> to vector<1x256xf32>
    %c0_9 = arith.constant 0 : index
    %c0_10 = arith.constant 0 : index
    %16 = memref.load %arg6[%c0_9, %c0_10] : memref<1x1xf32, #tpu.memory_space<smem>>
    %17 = vector.broadcast %16 : f32 to vector<1x256xf32>
    %18 = arith.addf %15, %17 : vector<1x256xf32>
    %19 = arith.negf %18 : vector<1x256xf32>
    %20 = math.exp %19 : vector<1x256xf32>
    %cst_11 = arith.constant 1.000000e+00 : f32
    %21 = vector.broadcast %cst_11 : f32 to vector<1x256xf32>
    %22 = arith.addf %21, %20 : vector<1x256xf32>
    %23 = arith.divf %21, %22 : vector<1x256xf32>
    %24 = arith.index_cast %c0_i32 : i32 to index
    %c0_12 = arith.constant 0 : index
    %c0_13 = arith.constant 0 : index
    %25 = vector.load %arg2[%24, %c0_12, %c0_13] : memref<1x256x256xf32, #tpu.memory_space<vmem>>, vector<1x256x256xf32>
    %26 = vector.shape_cast %25 : vector<1x256x256xf32> to vector<256x256xf32>
    %27 = vector.broadcast %23 : vector<1x256xf32> to vector<256x256xf32>
    %28 = arith.mulf %26, %27 : vector<256x256xf32>
    %29 = arith.index_cast %c0_i32 : i32 to index
    %c0_14 = arith.constant 0 : index
    %c0_15 = arith.constant 0 : index
    %30 = vector.load %arg7[%29, %c0_14, %c0_15] : memref<1x256x256xf32, #tpu.memory_space<vmem>>, vector<1x256x256xf32>
    %31 = vector.shape_cast %30 : vector<1x256x256xf32> to vector<256x256xf32>
    %32 = vector.shape_cast %28 : vector<256x256xf32> to vector<1x256x256xf32>
    tpu.vector_store %arg7[%29, %c0_14, %c0_15], %32 {strides = array<i32>} : memref<1x256x256xf32, #tpu.memory_space<vmem>>, vector<1x256x256xf32>,
    %c1_i32 = arith.constant 1 : i32
    return
  }
  func.func @transform_0(%arg0: i32, %arg1: i32) -> (i32, i32, i32) {
    %c0_i32 = arith.constant 0 : i32
    %c0_i32_0 = arith.constant 0 : i32
    return %arg0, %c0_i32, %arg1 : i32, i32, i32
  }
  func.func @transform_1(%arg0: i32, %arg1: i32) -> (i32, i32) {
    %c0_i32 = arith.constant 0 : i32
    %c0_i32_0 = arith.constant 0 : i32
    %c0_i32_1 = arith.constant 0 : i32
    return %c0_i32, %c0_i32_0 : i32, i32
  }
  func.func @transform_2(%arg0: i32, %arg1: i32) -> (i32, i32) {
    %c0_i32 = arith.constant 0 : i32
    %c0_i32_0 = arith.constant 0 : i32
    %c0_i32_1 = arith.constant 0 : i32
    return %c0_i32, %c0_i32_0 : i32, i32
  }
  func.func @transform_3(%arg0: i32, %arg1: i32) -> (i32, i32) {
    %c0_i32 = arith.constant 0 : i32
    %c0_i32_0 = arith.constant 0 : i32
    %c0_i32_1 = arith.constant 0 : i32
    return %c0_i32, %c0_i32_0 : i32, i32
  }
  func.func @transform_4(%arg0: i32, %arg1: i32) -> (i32, i32) {
    %c0_i32 = arith.constant 0 : i32
    %c0_i32_0 = arith.constant 0 : i32
    %c0_i32_1 = arith.constant 0 : i32
    return %c0_i32, %c0_i32_0 : i32, i32
  }
  func.func @transform_5(%arg0: i32, %arg1: i32) -> (i32, i32, i32) {
    %c0_i32 = arith.constant 0 : i32
    %c0_i32_0 = arith.constant 0 : i32
    return %arg0, %c0_i32, %arg1 : i32, i32, i32
  }
}

</mosaic_0001>

<bundles_post_ra>
// kernel: attention_layer.1
= control target key start
LH: loop header
LB: loop body
LE: loop exit
PB: predicated region body
PF: predicated region fallthrough
CT: control target
= control target key end

     0   :  { %s929_s20 = smov 0   ;;  %s931_s21 = smov 0   ;;  %s1480_s0 = inlined_call_operand.vmem [shape: f32[2,256,256], index: 0, kind: input, shape index: {}]   ;;  %s1481_s1 = inlined_call_operand.vmem [shape: bf16[32,256], index: 1, kind: input, shape index: {}]   ;;  %s1482_s2 = inlined_call_operand.vmem [shape: f32[32,1], index: 2, kind: input, shape index: {}]   ;;  %s1483_s3 = inlined_call_operand.vmem [shape: f32[32,1], index: 3, kind: input, shape index: {}]   ;;  %s1484_s4 = inlined_call_operand.<no memory space> [shape: f32[1,1], index: 4, kind: input, shape index: {}]   ;;  %s1485_s5 = inlined_call_operand.vmem [shape: f32[2,256,256], index: 5, kind: output, shape index: {}]  }
   0x1   :  { %10 = sst [smem:[#allocation2]] %s1484_s4  ;;  %s933_s22 = smov 0  }
   0x2 LB: > { %s28_s4 = sadd.s32 1, %s889_s21  ;;  %p804_p0 = scmp.ge.s32.totalorder %s893_s22, 1  ;;  %s893_s22 = sphi %s933_s22, %s16_s22   ;;  %s889_s21 = sphi %s931_s21, %s1586_s21   ;;  %s885_s20 = sphi %s929_s20, %s1585_s20  }
   0x3   : > { %p30_p1 = scmp.ge.s32.totalorder %s28_s4, 2  ;;  %p209_p2 = scmp.lt.s32.totalorder %s893_s22, 3 }
   0x5   : > { %s1588_s4 = smov (%p30_p1, %s28_s4), 0  ;;  %p210_p3 = pnand %p804_p0, %p209_p2 }
   0x7   : > { %213 = sbr.rel (%p210_p3) target bundleno = 319 (0x13f), region = 40 }
   0xc   : > { %p246_p4 = scmp.lt.s32.totalorder %s885_s20, 1  ;;  %v895_v25 = vmov 0   ;;  %s543_s13 = sld [smem:[#allocation2]] }
   0xd   : > { %860 = vset.pattern.permute.xlu0 %v895_v25  ;;  %861 = vset.pattern.permute.xlu1 %v895_v25 }
   0xe   : > { %s1590_s20 = smov (!%p246_p4, %s885_s20), 1  ;;  %862 = vset.pattern.permute.xlu2 %v895_v25 }
   0xf   : > { %s829_s23 = sshll.u32 %s1590_s20, 9 }
  0x10   : > { %s955_s26 = scalar_lea.vmem %s1480_s0, %s829_s23  ;;  %s1268_s16 = scalar_lea.vmem %s1485_s5, %s829_s23 }
  0x11   : > { %v958_v0 = vld [vmem:[%s955_s26 + $0xe0] sm:$0xff]  ;;  %v961_v1 = vld [vmem:[%s955_s26 + $0xf0] sm:$0xff]  ;;  %v972_v5 = vld [vmem:[%s955_s26 + $0xe8] sm:$0xff] }
  0x12   : > { %v964_v2 = vld [vmem:[%s955_s26 + $0x1e0] sm:$0xff]  ;;  %v347_v3 = vpack.c.bf16 %v961_v1, %v958_v0  ;;  %v969_v4 = vld [vmem:[%s955_s26 + $0x1f0] sm:$0xff]  ;;  %1520 = vst [vmem:[#allocation4_spill] sm:$0xff] %v972_v5  ;;  %v975_v6 = vld [vmem:[%s955_s26 + $0xf8] sm:$0xff] }
  0x13   : > { %1519 = vst [vmem:[#allocation3_spill] sm:$0xff] %v969_v4  ;;  %v363_v7 = vpack.c.bf16 %v969_v4, %v964_v2  ;;  %v348_v8 = vpack.c.bf16 %v975_v6, %v972_v5  ;;  %v982_v9 = vld [vmem:[%s955_s26 + $0x1e8] sm:$0xff]  ;;  %v985_v10 = vld [vmem:[%s955_s26 + $0x1f8] sm:$0xff]  ;;  %v988_v11 = vld [vmem:[%s955_s26 + $0xc0] sm:$0xff] }
  0x14   : > { %1521 = vst [vmem:[#allocation5_spill] sm:$0xff] %v975_v6  ;;  %409 = vmatpush.bf16.msra.mxu0 %v347_v3  ;;  %v364_v12 = vpack.c.bf16 %v985_v10, %v982_v9  ;;  %v993_v13 = vld [vmem:[%s955_s26 + $0xd0] sm:$0xff]  ;;  %v996_v14 = vld [vmem:[%s955_s26 + $0x1c0] sm:$0xff]  ;;  %v1006_v18 = vld [vmem:[%s955_s26 + $0xc8] sm:$0xff] }
  0x15   : > { %1522 = vst [vmem:[#allocation6_spill] sm:$0xff] %v982_v9  ;;  %v999_v15 = vld [vmem:[%s955_s26 + $0x1d0] sm:$0xff]  ;;  %428 = vmatpush.bf16.msra.mxu1 %v363_v7  ;;  %447 = vmatpush.bf16.msra.mxu2 %v348_v8  ;;  %v345_v16 = vpack.c.bf16 %v993_v13, %v988_v11  ;;  %v1009_v19 = vld [vmem:[%s955_s26 + $0xd8] sm:$0xff]  ;;  %v1012_v20 = vld [vmem:[%s955_s26 + $0x1c8] sm:$0xff] }
  0x16   : > { %1523 = vst [vmem:[#allocation7_spill] sm:$0xff] %v985_v10  ;;  %v361_v17 = vpack.c.bf16 %v999_v15, %v996_v14  ;;  %466 = vmatpush.bf16.msra.mxu3 %v364_v12  ;;  %v346_v21 = vpack.c.bf16 %v1009_v19, %v1006_v18  ;;  %v1017_v22 = vld [vmem:[%s955_s26 + $0x1d8] sm:$0xff]  ;;  %v1020_v23 = vld [vmem:[%s955_s26 + $0xa0] sm:$0xff]  ;;  %v1023_v24 = vld [vmem:[%s955_s26 + $0xb0] sm:$0xff] }
  0x17   : > { %1524 = vst [vmem:[#allocation8_spill] sm:$0xff] %v1006_v18  ;;  %v362_v26 = vpack.c.bf16 %v1017_v22, %v1012_v20  ;;  %v1028_v27 = vld [vmem:[%s955_s26 + $0x1a0] sm:$0xff]  ;;  %v1031_v28 = vld [vmem:[%s955_s26 + $0x1b0] sm:$0xff]  ;;  %v1034_v29 = vld [vmem:[%s955_s26 + $0xa8] sm:$0xff]  ;;  %v343_v30 = vpack.c.bf16 %v1023_v24, %v1020_v23 }
  0x18   : > { %1525 = vst [vmem:[#allocation9_spill] sm:$0xff] %v1009_v19  ;;  %410 = vmatpush.bf16.msra.mxu0 %v345_v16  ;;  %v1039_v31 = vld [vmem:[%s955_s26 + $0xb8] sm:$0xff]  ;;  %v1042_v32 = vld [vmem:[%s955_s26 + $0x1a8] sm:$0xff]  ;;  %v359_v34 = vpack.c.bf16 %v1031_v28, %v1028_v27  ;;  %v1052_v36 = vld [vmem:[%s955_s26 + $0x80] sm:$0xff] }
  0x19   : > { %1526 = vst [vmem:[#allocation10_spill] sm:$0xff] %v1012_v20  ;;  %v1045_v33 = vld [vmem:[%s955_s26 + $0x1b8] sm:$0xff]  ;;  %429 = vmatpush.bf16.msra.mxu1 %v361_v17  ;;  %448 = vmatpush.bf16.msra.mxu2 %v346_v21  ;;  %v344_v35 = vpack.c.bf16 %v1039_v31, %v1034_v29  ;;  %v1055_v37 = vld [vmem:[%s955_s26 + $0x90] sm:$0xff]  ;;  %v1058_v38 = vld [vmem:[%s955_s26 + $0x180] sm:$0xff] }
  0x1a   : > { %1527 = vst [vmem:[#allocation11_spill] sm:$0xff] %v1017_v22  ;;  %467 = vmatpush.bf16.msra.mxu3 %v362_v26  ;;  %v360_v39 = vpack.c.bf16 %v1045_v33, %v1042_v32  ;;  %v1063_v40 = vld [vmem:[%s955_s26 + $0x190] sm:$0xff]  ;;  %v1066_v41 = vld [vmem:[%s955_s26 + $0x88] sm:$0xff]  ;;  %v1069_v42 = vld [vmem:[%s955_s26 + $0x98] sm:$0xff]  ;;  %v341_v45 = vpack.c.bf16 %v1055_v37, %v1052_v36 }
  0x1b   : > { %1528 = vst [vmem:[#allocation12_spill] sm:$0xff] %v1034_v29  ;;  %v1072_v43 = vld [vmem:[%s955_s26 + $0x188] sm:$0xff]  ;;  %v1075_v44 = vld [vmem:[%s955_s26 + $0x198] sm:$0xff]  ;;  %v357_v46 = vpack.c.bf16 %v1063_v40, %v1058_v38  ;;  %v342_v47 = vpack.c.bf16 %v1069_v42, %v1066_v41  ;;  %v1084_v48 = vld [vmem:[%s955_s26 + $0x60] sm:$0xff] }
  0x1c   : > { %1529 = vst [vmem:[#allocation13_spill] sm:$0xff] %v1039_v31  ;;  %411 = vmatpush.bf16.msra.mxu0 %v343_v30  ;;  %v1087_v49 = vld [vmem:[%s955_s26 + $0x70] sm:$0xff]  ;;  %v1090_v50 = vld [vmem:[%s955_s26 + $0x160] sm:$0xff]  ;;  %v358_v51 = vpack.c.bf16 %v1075_v44, %v1072_v43  ;;  %v1098_v53 = vld [vmem:[%s955_s26 + $0x68] sm:$0xff] }
  0x1d   : > { %1530 = vst [vmem:[#allocation14_spill] sm:$0xff] %v1042_v32  ;;  %430 = vmatpush.bf16.msra.mxu1 %v359_v34  ;;  %449 = vmatpush.bf16.msra.mxu2 %v344_v35  ;;  %v1095_v52 = vld [vmem:[%s955_s26 + $0x170] sm:$0xff]  ;;  %v1101_v54 = vld [vmem:[%s955_s26 + $0x78] sm:$0xff]  ;;  %v1104_v55 = vld [vmem:[%s955_s26 + $0x168] sm:$0xff]  ;;  %v339_v57 = vpack.c.bf16 %v1087_v49, %v1084_v48 }
  0x1e   : > { %1531 = vst [vmem:[#allocation15_spill] sm:$0xff] %v1045_v33  ;;  %468 = vmatpush.bf16.msra.mxu3 %v360_v39  ;;  %v1107_v56 = vld [vmem:[%s955_s26 + $0x178] sm:$0xff]  ;;  %v355_v58 = vpack.c.bf16 %v1095_v52, %v1090_v50  ;;  %v340_v59 = vpack.c.bf16 %v1101_v54, %v1098_v53  ;;  %v1116_v60 = vld [vmem:[%s955_s26 + $0x40] sm:$0xff]  ;;  %v1119_v61 = vld [vmem:[%s955_s26 + $0x50] sm:$0xff] }
  0x1f   : > { %1532 = vst [vmem:[#allocation16_spill] sm:$0xff] %v1066_v41  ;;  %v1122_v62 = vld [vmem:[%s955_s26 + $0x140] sm:$0xff]  ;;  %v356_v63 = vpack.c.bf16 %v1107_v56, %v1104_v55  ;;  %v1127_v3 = vld [vmem:[%s955_s26 + $0x150] sm:$0xff]  ;;  %v1130_v7 = vld [vmem:[%s955_s26 + $0x48] sm:$0xff]  ;;  %v337_v17 = vpack.c.bf16 %v1119_v61, %v1116_v60 }
  0x20   : > { %1533 = vst [vmem:[#allocation17_spill] sm:$0xff] %v1069_v42  ;;  %412 = vmatpush.bf16.msra.mxu0 %v341_v45  ;;  %v1133_v8 = vld [vmem:[%s955_s26 + $0x58] sm:$0xff]  ;;  %v1136_v12 = vld [vmem:[%s955_s26 + $0x148] sm:$0xff]  ;;  %v353_v21 = vpack.c.bf16 %v1127_v3, %v1122_v62  ;;  %v1148_v26 = vld [vmem:[%s955_s26 + $0x20] sm:$0xff] }
  0x21   : > { %1534 = vst [vmem:[#allocation18_spill] sm:$0xff] %v1072_v43  ;;  %431 = vmatpush.bf16.msra.mxu1 %v357_v46  ;;  %450 = vmatpush.bf16.msra.mxu2 %v342_v47  ;;  %v1139_v16 = vld [vmem:[%s955_s26 + $0x158] sm:$0xff]  ;;  %v338_v25 = vpack.c.bf16 %v1133_v8, %v1130_v7  ;;  %v1151_v30 = vld [vmem:[%s955_s26 + $0x30] sm:$0xff]  ;;  %v1154_v34 = vld [vmem:[%s955_s26 + $0x120] sm:$0xff] }
  0x22   : > { %1535 = vst [vmem:[#allocation19_spill] sm:$0xff] %v1075_v44  ;;  %469 = vmatpush.bf16.msra.mxu3 %v358_v51  ;;  %v354_v35 = vpack.c.bf16 %v1139_v16, %v1136_v12  ;;  %v1159_v39 = vld [vmem:[%s955_s26 + $0x130] sm:$0xff]  ;;  %v1162_v45 = vld [vmem:[%s955_s26 + $0x28] sm:$0xff]  ;;  %v1165_v46 = vld [vmem:[%s955_s26 + $0x38] sm:$0xff] }
  0x23   : > { %1536 = vst [vmem:[#allocation20_spill] sm:$0xff] %v1098_v53  ;;  %v1168_v47 = vld [vmem:[%s955_s26 + $0x128] sm:$0xff]  ;;  %v1171_v51 = vld [vmem:[%s955_s26 + $0x138] sm:$0xff]  ;;  %v336_v10 = vpack.c.bf16 %v1165_v46, %v1162_v45  ;;  %v1186_v9 = vld [vmem:[%s955_s26] sm:$0xff] }
  0x24   : > { %1537 = vst [vmem:[#allocation21_spill] sm:$0xff] %v1101_v54  ;;  %413 = vmatpush.bf16.msra.mxu0 %v339_v57  ;;  %v365_v57 = vld [vmem:[%s1482_s2] sm:$0xff]  ;;  %v1197_v20 = vld [vmem:[%s955_s26 + $0x110] sm:$0xff]  ;;  %v1206_v33 = vld [vmem:[%s955_s26 + $0x108] sm:$0xff] }
  0x25   : > { %1538 = vst [vmem:[#allocation22_spill] sm:$0xff] %v1104_v55  ;;  %432 = vmatpush.bf16.msra.mxu1 %v355_v58  ;;  %451 = vmatpush.bf16.msra.mxu2 %v340_v59  ;;  %v335_v58 = vpack.c.bf16 %v1151_v30, %v1148_v26  ;;  %v367_v59 = vld [vmem:[%s1482_s2 + $0x10] sm:$0xff]  ;;  %v1192_v22 = vld [vmem:[%s955_s26 + $0x100] sm:$0xff]  ;;  %v1209_v32 = vld [vmem:[%s955_s26 + $0x118] sm:$0xff] }
  0x26   : > { %1539 = vst [vmem:[#allocation23_spill] sm:$0xff] %v1107_v56  ;;  %470 = vmatpush.bf16.msra.mxu3 %v356_v63  ;;  %371 = vperm.xlu0 %860, %v365_v57   ;;  %v351_v63 = vpack.c.bf16 %v1159_v39, %v1154_v34  ;;  %v352_v57 = vpack.c.bf16 %v1171_v51, %v1168_v47  ;;  %v493_v44 = vld [vmem:[%s1483_s3] sm:$0xff] }
  0x27   : > { %1540 = vst [vmem:[#allocation24_spill] sm:$0xff] %v1130_v7  ;;  %381 = vperm.xlu1 %861, %v367_v59   ;;  %v811_v43 = vld [vmem:[%s1481_s1] sm:$0xf]  ;;  %v832_v59 = vld [vmem:[%s1481_s1 + $0x4] sm:$0xf0]  ;;  %499 = vperm.xlu2 %862, %v493_v44   ;;  %v349_v56 = vpack.c.bf16 %v1197_v20, %v1192_v22 }
  0x28   : > { %1541 = vst [vmem:[#allocation25_spill] sm:$0xff] %v1133_v8  ;;  %414 = vmatpush.bf16.msra.mxu0 %v337_v17  ;;  %v1189_v17 = vld [vmem:[%s955_s26 + $0x10] sm:$0xff]  ;;  %v831_v55 = vld [vmem:[%s1481_s1 + $0x4] sm:$0xf]  ;;  %v366_v44 = vld [vmem:[%s1482_s2 + $0x8] sm:$0xff] }
  0x29   : > { %1542 = vst [vmem:[#allocation26_spill] sm:$0xff] %v1136_v12  ;;  %433 = vmatpush.bf16.msra.mxu1 %v353_v21  ;;  %452 = vmatpush.bf16.msra.mxu2 %v338_v25  ;;  %v1200_v21 = vld [vmem:[%s955_s26 + $0x8] sm:$0xff]  ;;  %v1203_v25 = vld [vmem:[%s955_s26 + $0x18] sm:$0xff] }
  0x2a   : > { %1543 = vst [vmem:[#allocation27_spill] sm:$0xff] %v1139_v16  ;;  %471 = vmatpush.bf16.msra.mxu3 %v354_v35  ;;  %v333_v35 = vpack.c.bf16 %v1189_v17, %v1186_v9  ;;  %v813_v16 = vld [vmem:[%s1481_s1 + $0x8] sm:$0xf0]  ;;  %v368_v12 = vld [vmem:[%s1482_s2 + $0x18] sm:$0xff] }
  0x2b   : > { %1544 = vst [vmem:[#allocation28_spill] sm:$0xff] %v1162_v45 }
  0x2c   : > { %1545 = vst [vmem:[#allocation29_spill] sm:$0xff] %v1165_v46  ;;  %415 = vmatpush.bf16.msra.mxu0 %v335_v58  ;;  %v334_v58 = vpack.c.bf16 %v1203_v25, %v1200_v21 }
  0x2d   : > { %1546 = vst [vmem:[#allocation30_spill] sm:$0xff] %v1168_v47  ;;  %434 = vmatpush.bf16.msra.mxu1 %v351_v63  ;;  %453 = vmatpush.bf16.msra.mxu2 %v336_v10  ;;  %v350_v10 = vpack.c.bf16 %v1209_v32, %v1206_v33  ;;  %v812_v63 = vor.u32 %v832_v59, %v811_v43  ;;  %v494_v47 = vld [vmem:[%s1483_s3 + $0x8] sm:$0xff]  ;;  %v495_v43 = vld [vmem:[%s1483_s3 + $0x10] sm:$0xff] }
  0x2e   : > { %1547 = vst [vmem:[#allocation31_spill] sm:$0xff] %v1171_v51  ;;  %472 = vmatpush.bf16.msra.mxu3 %v352_v57  ;;  %v816_v51 = vor.u32 %v831_v55, %v813_v16  ;;  %376 = vperm.xlu0 %860, %v366_v44   ;;  %v496_v55 = vld [vmem:[%s1483_s3 + $0x18] sm:$0xff]  ;;  %v833_v16 = vld [vmem:[%s1481_s1 + $0x14] sm:$0xf] }
  0x2f   : > { %1548 = vst [vmem:[#allocation32_spill] sm:$0xff] %v1200_v21  ;;  %386 = vperm.xlu1 %861, %v368_v12   ;;  %504 = vperm.xlu2 %862, %v494_v47   ;;  %v834_v12 = vld [vmem:[%s1481_s1 + $0x14] sm:$0xf0]  ;;  %v821_v47 = vld [vmem:[%s1481_s1 + $0x18] sm:$0xf0] }
  0x30   : > { %1549 = vst [vmem:[#allocation33_spill] sm:$0xff] %v1203_v25  ;;  %416 = vmatpush.bf16.msra.mxu0 %v333_v35  ;;  %v824_v57 = vor.u32 %v833_v16, %v821_v47 }
  0x31   : > { %1550 = vst [vmem:[#allocation34_spill] sm:$0xff] %v1206_v33  ;;  %435 = vmatpush.bf16.msra.mxu1 %v349_v56  ;;  %454 = vmatpush.bf16.msra.mxu2 %v334_v58  ;;  %v819_v56 = vld [vmem:[%s1481_s1 + $0x10] sm:$0xf] }
  0x32   : > { %1551 = vst [vmem:[#allocation35_spill] sm:$0xff] %v1209_v32  ;;  %473 = vmatpush.bf16.msra.mxu3 %v350_v10 }
  0x33   : > { %417 = vmatmul.bf16.vlgmr.msra.gmra.mxu0 %v812_v63 }
  0x34   : > { %436 = vmatmul.bf16.vlgmr.msra.gmra.mxu1 %v816_v51  ;;  %455 = vmatmul.bf16.vlgmr.msra.gmra.mxu2 %v812_v63 }
  0x35   : > { %474 = vmatmul.bf16.vlgmr.msra.gmra.mxu3 %v816_v51  ;;  %v820_v51 = vor.u32 %v834_v12, %v819_v56 }
  0x36   : > { %509 = vperm.xlu0 %860, %v495_v43  }
  0x37   : > { %514 = vperm.xlu1 %861, %v496_v55  }
  0x43   : > { %422 = vmatmul.bf16.gmra.mxu0 %v820_v51 }
  0x44   : > { %441 = vmatmul.bf16.gmra.mxu1 %v824_v57  ;;  %460 = vmatmul.bf16.gmra.mxu2 %v820_v51 }
  0x45   : > { %479 = vmatmul.bf16.gmra.mxu3 %v824_v57 }
  0x81   : > { %v500_v33 = vpop.permute.xlu2 %499 }
  0x89   : > { %v505_v54 = vpop.permute.xlu2 %504 }
  0x98   : > { %v372_v35 = vpop.permute.xlu0 %371 }
  0x99   : > { %v382_v55 = vpop.permute.xlu1 %381 }
  0xa0   : > { %v377_v32 = vpop.permute.xlu0 %376 }
  0xa1   : > { %v387_v31 = vpop.permute.xlu1 %386 }
  0xb0   : > { %v418_v59 = vpop.f32.mrf.mxu0 }
  0xb1   : > { %v437_v58 = vpop.f32.mrf.mxu1  ;;  %v419_v5 = vadd.f32 %v418_v59, %v372_v35 }
  0xb3   : > { %v438_v51 = vadd.f32 %v437_v58, %v419_v5 }
  0xb5   : > { %v485_v53 = vmax.f32 %v438_v51, 0.0 }
  0xb7   : > { %v456_v44 = vpop.f32.mrf.mxu2  ;;  %v517_v5 = vmul.f32 %v500_v33, %v485_v53 }
  0xb8   : > { %v475_v10 = vpop.f32.mrf.mxu3  ;;  %v420_v63 = vpop.f32.mrf.mxu0  ;;  %v457_v41 = vadd.f32 %v456_v44, %v372_v35 }
  0xb9   : > { %v439_v43 = vpop.f32.mrf.mxu1  ;;  %v421_v6 = vadd.f32 %v420_v63, %v377_v32 }
  0xba   : > { %v476_v4 = vadd.f32 %v475_v10, %v457_v41 }
  0xbb   : > { %v440_v12 = vadd.f32 %v439_v43, %v421_v6  ;;  %v510_v6 = vpop.permute.xlu0 %509 }
  0xbc   : > { %v486_v44 = vmax.f32 %v476_v4, 0.0 }
  0xbd   : > { %v487_v42 = vmax.f32 %v440_v12, 0.0  ;;  %v515_v12 = vpop.permute.xlu1 %514 }
  0xbe   : > { %v518_v41 = vmul.f32 %v500_v33, %v486_v44 }
  0xbf   : > { %v458_v19 = vpop.f32.mrf.mxu2  ;;  %v519_v25 = vmul.f32 %v505_v54, %v487_v42 }
  0xc0   : > { %v477_v18 = vpop.f32.mrf.mxu3  ;;  %v423_v56 = vpop.f32.mrf.mxu0  ;;  %v459_v29 = vadd.f32 %v458_v19, %v377_v32 }
  0xc1   : > { %v424_v16 = vadd.f32 %v423_v56, %v382_v55  ;;  %v442_v47 = vpop.f32.mrf.mxu1  ;;  %v525_v32 = vadd.f32 %v519_v25, %v517_v5 }
  0xc2   : > { %v478_v46 = vadd.f32 %v477_v18, %v459_v29 }
  0xc3   : > { %v443_v57 = vadd.f32 %v442_v47, %v424_v16 }
  0xc4   : > { %v488_v19 = vmax.f32 %v478_v46, 0.0 }
  0xc5   : > { %v489_v8 = vmax.f32 %v443_v57, 0.0 }
  0xc7   : > { %v461_v7 = vpop.f32.mrf.mxu2  ;;  %v521_v58 = vmul.f32 %v510_v6, %v489_v8 }
  0xc8   : > { %v462_v45 = vadd.f32 %v461_v7, %v382_v55  ;;  %v480_v63 = vpop.f32.mrf.mxu3  ;;  %v425_v59 = vpop.f32.mrf.mxu0  ;;  %v520_v7 = vmul.f32 %v505_v54, %v488_v19 }
  0xc9   : > { %v426_v21 = vadd.f32 %v425_v59, %v387_v31  ;;  %v444_v56 = vpop.f32.mrf.mxu1  ;;  %v526_v51 = vadd.f32 %v525_v32, %v521_v58  ;;  %v544_v58 = vstv %s543_s13 }
  0xca   : > { %v481_v43 = vadd.f32 %v480_v63, %v462_v45  ;;  %v534_v53 = vadd.f32 %v520_v7, %v518_v41 }
  0xcb   : > { %v445_v16 = vadd.f32 %v444_v56, %v426_v21 }
  0xcc   : > { %v490_v47 = vmax.f32 %v481_v43, 0.0 }
  0xcd   : > { %v491_v35 = vmax.f32 %v445_v16, 0.0 }
  0xce   : > { %v522_v10 = vmul.f32 %v510_v6, %v490_v47 }
  0xcf   : > { %v523_v18 = vmul.f32 %v515_v12, %v491_v35  ;;  %v463_v29 = vpop.f32.mrf.mxu2 }
  0xd0   : > { %v464_v55 = vadd.f32 %v463_v29, %v387_v31  ;;  %v482_v57 = vpop.f32.mrf.mxu3  ;;  %v535_v21 = vadd.f32 %v534_v53, %v522_v10 }
  0xd1   : > { %v527_v42 = vadd.f32 %v526_v51, %v523_v18 }
  0xd2   : > { %v483_v45 = vadd.f32 %v482_v57, %v464_v55 }
  0xd3   : > { %v528_v63 = vrot.slane %v527_v42, 4 }
  0xd4   : > { %v492_v8 = vmax.f32 %v483_v45, 0.0 }
  0xd5   : > { %v529_v46 = vadd.f32 %v528_v63, %v527_v42 }
  0xd6   : > { %v524_v25 = vmul.f32 %v515_v12, %v492_v8 }
  0xd7   : > { %v530_v4 = vrot.slane %v529_v46, 2 }
  0xd8   : > { %v536_v59 = vadd.f32 %v535_v21, %v524_v25 }
  0xd9   : > { %v531_v43 = vadd.f32 %v530_v4, %v529_v46 }
  0xda   : > { %v537_v56 = vrot.slane %v536_v59, 4 }
  0xdb   : > { %v532_v5 = vrot.slane %v531_v43, 1 }
  0xdc   : > { %v538_v54 = vadd.f32 %v537_v56, %v536_v59 }
  0xdd   : > { %v533_v31 = vadd.f32 %v532_v5, %v531_v43 }
  0xde   : > { %v539_v16 = vrot.slane %v538_v54, 2 }
  0xdf   : > { %v545_v19 = vadd.f32 %v544_v58, %v533_v31 }
  0xe0   : > { %v540_v33 = vadd.f32 %v539_v16, %v538_v54 }
  0xe1   : > { %v825_v6 = vmul.f32 -1.442695, %v545_v19 }
  0xe2   : > { %v541_v32 = vrot.slane %v540_v33, 1 }
  0xe3   : > { %863 = vpow2.f32 %v825_v6 }
  0xe4   : > { %v542_v35 = vadd.f32 %v541_v32, %v540_v33  ;;  %v1552_v33 = vld [vmem:[#allocation3_spill] sm:$0xff] }
  0xe6   : > { %v546_v44 = vadd.f32 %v544_v58, %v542_v35 }
  0xe8   : > { %v826_v18 = vmul.f32 -1.442695, %v546_v44  ;;  %v1555_v44 = vld [vmem:[#allocation28_spill] sm:$0xff] }
  0xe9   : > { %v864_v47 = vpop.eup %863 }
  0xea   : > { %v553_v51 = vadd.f32 1.0, %v864_v47  ;;  %v1556_v47 = vld [vmem:[#allocation29_spill] sm:$0xff] }
  0xec   : > { %865 = vrcp.f32 %v553_v51  ;;  %v566_v42 = vand.u32 2147483648, %v553_v51  ;;  %v564_v41 = vand.u32 2147483647, %v553_v51  ;;  %vm560_vm1 = vweird.f32 %v553_v51 }
  0xed   : > { %867 = vpow2.f32 %v826_v18  ;;  %v1557_v18 = vld [vmem:[#allocation24_spill] sm:$0xff] }
  0xee   : > { %v567_v63 = vor.u32 1.1754944e-38, %v566_v42  ;;  %vm565_vm3 = vcmp.eq.f32.partialorder %v564_v41, 8.507059e+37 }
  0xf2   : > { %v866_v12 = vpop.eup %865 }
  0xf3   : > { %v556_v29 = vmul.f32 %v866_v12, %v553_v51  ;;  %v868_v7 = vpop.eup %867  ;;  %vm561_vm0 = vweird.f32 %v866_v12 }
  0xf4   : > { %v1261_v10 = vadd.f32 1.0, %v868_v7  ;;  %vm562_vm2 = vmor %vm560_vm1, %vm561_vm0 }
  0xf5   : > { %v557_v55 = vsub.f32 1.0, %v556_v29  ;;  %v1558_v29 = vld [vmem:[#allocation25_spill] sm:$0xff] }
  0xf6   : > { %869 = vrcp.f32 %v1261_v10  ;;  %vm575_vm5 = vweird.f32 %v1261_v10 }
  0xf7   : > { %v558_v57 = vmul.f32 %v866_v12, %v557_v55  ;;  %v1559_v55 = vld [vmem:[#allocation20_spill] sm:$0xff] }
  0xf9   : > { %v559_v45 = vadd.f32 %v866_v12, %v558_v57  ;;  %v1560_v57 = vld [vmem:[#allocation21_spill] sm:$0xff] }
  0xfb   : > { %v563_v53 = vsel %vm562_vm2, %v866_v12, %v559_v45 }
  0xfc   : > { %v1270_v8 = vsel %vm565_vm3, %v567_v63, %v563_v53  ;;  %v1562_v63 = vld [vmem:[#allocation17_spill] sm:$0xff] }
  0xfd   : > { %v585_v46 = vmul.f32 %v1270_v8, %v1186_v9  ;;  %v587_v21 = vmul.f32 %v1270_v8, %v1189_v17  ;;  %v589_v25 = vmul.f32 %v1270_v8, %v1148_v26  ;;  %v591_v4 = vmul.f32 %v1270_v8, %v1151_v30  ;;  %v870_v26 = vpop.eup %869 }
  0xfe   : > { %v593_v59 = vmul.f32 %v1270_v8, %v1116_v60  ;;  %v595_v43 = vmul.f32 %v1270_v8, %v1119_v61  ;;  %v597_v9 = vmul.f32 %v1270_v8, %v1084_v48  ;;  %v599_v17 = vmul.f32 %v1270_v8, %v1087_v49 }
  0xff   : > { %649 = vst [vmem:[%s1268_s16] sm:$0xff] %v585_v46  ;;  %v601_v60 = vmul.f32 %v1270_v8, %v1052_v36  ;;  %v603_v61 = vmul.f32 %v1270_v8, %v1055_v37  ;;  %v605_v48 = vmul.f32 %v1270_v8, %v1020_v23  ;;  %v571_v30 = vmul.f32 %v870_v26, %v1261_v10 }
 0x100   : > { %651 = vst [vmem:[%s1268_s16 + $0x10] sm:$0xff] %v587_v21  ;;  %v607_v49 = vmul.f32 %v1270_v8, %v1023_v24  ;;  %v609_v36 = vmul.f32 %v1270_v8, %v988_v11  ;;  %v611_v37 = vmul.f32 %v1270_v8, %v993_v13  ;;  %v613_v23 = vmul.f32 %v1270_v8, %v958_v0  ;;  %v1564_v21 = vld [vmem:[#allocation13_spill] sm:$0xff] }
 0x101   : > { %653 = vst [vmem:[%s1268_s16 + $0x20] sm:$0xff] %v589_v25  ;;  %v572_v56 = vsub.f32 1.0, %v571_v30  ;;  %v615_v24 = vmul.f32 %v1270_v8, %v961_v1  ;;  %v617_v11 = vmul.f32 %v1270_v8, %v1192_v22  ;;  %v619_v13 = vmul.f32 %v1270_v8, %v1197_v20 }
 0x102   : > { %655 = vst [vmem:[%s1268_s16 + $0x30] sm:$0xff] %v591_v4  ;;  %v621_v0 = vmul.f32 %v1270_v8, %v1154_v34  ;;  %v623_v1 = vmul.f32 %v1270_v8, %v1159_v39  ;;  %v625_v58 = vmul.f32 %v1270_v8, %v1122_v62  ;;  %v627_v20 = vmul.f32 %v1270_v8, %v1127_v3  ;;  %v1565_v4 = vld [vmem:[#allocation8_spill] sm:$0xff] }
 0x103   : > { %657 = vst [vmem:[%s1268_s16 + $0x40] sm:$0xff] %v593_v59  ;;  %v573_v5 = vmul.f32 %v870_v26, %v572_v56  ;;  %v629_v22 = vmul.f32 %v1270_v8, %v1090_v50  ;;  %vm576_vm4 = vweird.f32 %v870_v26  ;;  %v631_v39 = vmul.f32 %v1270_v8, %v1095_v52  ;;  %v1572_v56 = vld [vmem:[#allocation31_spill] sm:$0xff] }
 0x104   : > { %659 = vst [vmem:[%s1268_s16 + $0x50] sm:$0xff] %v595_v43  ;;  %v581_v62 = vand.u32 2147483648, %v1261_v10  ;;  %v633_v54 = vmul.f32 %v1270_v8, %v1058_v38  ;;  %v579_v50 = vand.u32 2147483647, %v1261_v10  ;;  %v635_v3 = vmul.f32 %v1270_v8, %v1063_v40  ;;  %vm577_vm6 = vmor %vm575_vm5, %vm576_vm4  ;;  %v1561_v10 = vld [vmem:[#allocation16_spill] sm:$0xff]  ;;  %v1566_v43 = vld [vmem:[#allocation9_spill] sm:$0xff] }
 0x105   : > { %661 = vst [vmem:[%s1268_s16 + $0x60] sm:$0xff] %v597_v9  ;;  %v574_v34 = vadd.f32 %v870_v26, %v573_v5  ;;  %v637_v52 = vmul.f32 %v1270_v8, %v1028_v27  ;;  %v639_v38 = vmul.f32 %v1270_v8, %v1031_v28  ;;  %v641_v40 = vmul.f32 %v1270_v8, %v996_v14  ;;  %v1553_v14 = vld [vmem:[#allocation32_spill] sm:$0xff] }
 0x106   : > { %663 = vst [vmem:[%s1268_s16 + $0x70] sm:$0xff] %v599_v17  ;;  %v582_v16 = vor.u32 1.1754944e-38, %v581_v62  ;;  %vm580_vm7 = vcmp.eq.f32.partialorder %v579_v50, 8.507059e+37  ;;  %v643_v19 = vmul.f32 %v1270_v8, %v999_v15  ;;  %v645_v28 = vmul.f32 %v1270_v8, %v964_v2  ;;  %v1554_v15 = vld [vmem:[#allocation33_spill] sm:$0xff]  ;;  %v1578_v62 = vld [vmem:[#allocation19_spill] sm:$0xff]  ;;  %v1579_v50 = vld [vmem:[#allocation14_spill] sm:$0xff] }
 0x107   : > { %665 = vst [vmem:[%s1268_s16 + $0x80] sm:$0xff] %v601_v60  ;;  %v578_v31 = vsel %vm577_vm6, %v870_v26, %v574_v34  ;;  %v647_v6 = vmul.f32 %v1270_v8, %v1552_v33  ;;  %v1563_v8 = vld [vmem:[#allocation12_spill] sm:$0xff]  ;;  %v1568_v60 = vld [vmem:[#allocation5_spill] sm:$0xff]  ;;  %v1577_v34 = vld [vmem:[#allocation18_spill] sm:$0xff] }
 0x108   : > { %667 = vst [vmem:[%s1268_s16 + $0x90] sm:$0xff] %v603_v61  ;;  %v1363_v27 = vsel %vm580_vm7, %v582_v16, %v578_v31  ;;  %v1567_v26 = vld [vmem:[#allocation4_spill] sm:$0xff] }
 0x109   : > { %669 = vst [vmem:[%s1268_s16 + $0xa0] sm:$0xff] %v605_v48  ;;  %v586_v32 = vmul.f32 %v1363_v27, %v1553_v14  ;;  %v588_v35 = vmul.f32 %v1363_v27, %v1554_v15  ;;  %v590_v2 = vmul.f32 %v1363_v27, %v1555_v44  ;;  %v592_v51 = vmul.f32 %v1363_v27, %v1556_v47  ;;  %v1569_v48 = vld [vmem:[#allocation34_spill] sm:$0xff] }
 0x10a   : > { %671 = vst [vmem:[%s1268_s16 + $0xb0] sm:$0xff] %v607_v49  ;;  %v594_v12 = vmul.f32 %v1363_v27, %v1557_v18  ;;  %v596_v7 = vmul.f32 %v1363_v27, %v1558_v29  ;;  %v598_v42 = vmul.f32 %v1363_v27, %v1559_v55  ;;  %v600_v41 = vmul.f32 %v1363_v27, %v1560_v57  ;;  %v1570_v49 = vld [vmem:[#allocation35_spill] sm:$0xff] }
 0x10b   : > { %673 = vst [vmem:[%s1268_s16 + $0xc0] sm:$0xff] %v609_v36  ;;  %v602_v45 = vmul.f32 %v1363_v27, %v1561_v10  ;;  %v604_v53 = vmul.f32 %v1363_v27, %v1562_v63  ;;  %v606_v46 = vmul.f32 %v1363_v27, %v1563_v8  ;;  %v608_v25 = vmul.f32 %v1363_v27, %v1564_v21 }
 0x10c   : > { %675 = vst [vmem:[%s1268_s16 + $0xd0] sm:$0xff] %v611_v37  ;;  %v610_v59 = vmul.f32 %v1363_v27, %v1565_v4  ;;  %v612_v9 = vmul.f32 %v1363_v27, %v1566_v43  ;;  %v614_v17 = vmul.f32 %v1363_v27, %v1567_v26  ;;  %v616_v61 = vmul.f32 %v1363_v27, %v1568_v60  ;;  %v1571_v37 = vld [vmem:[#allocation30_spill] sm:$0xff] }
 0x10d   : > { %677 = vst [vmem:[%s1268_s16 + $0xe0] sm:$0xff] %v613_v23  ;;  %v618_v30 = vmul.f32 %v1363_v27, %v1569_v48  ;;  %v620_v36 = vmul.f32 %v1363_v27, %v1570_v49  ;;  %v622_v23 = vmul.f32 %v1363_v27, %v1571_v37 }
 0x10e   : > { %679 = vst [vmem:[%s1268_s16 + $0xf0] sm:$0xff] %v615_v24  ;;  %v624_v24 = vmul.f32 %v1363_v27, %v1572_v56 }
 0x10f   : > { %681 = vst [vmem:[%s1268_s16 + $0x100] sm:$0xff] %v617_v11  ;;  %v1573_v11 = vld [vmem:[#allocation26_spill] sm:$0xff] }
 0x110   : > { %683 = vst [vmem:[%s1268_s16 + $0x110] sm:$0xff] %v619_v13  ;;  %v626_v13 = vmul.f32 %v1363_v27, %v1573_v11 }
 0x111   : > { %685 = vst [vmem:[%s1268_s16 + $0x120] sm:$0xff] %v621_v0  ;;  %v1574_v0 = vld [vmem:[#allocation27_spill] sm:$0xff] }
 0x112   : > { %687 = vst [vmem:[%s1268_s16 + $0x130] sm:$0xff] %v623_v1  ;;  %v628_v5 = vmul.f32 %v1363_v27, %v1574_v0  ;;  %v1575_v1 = vld [vmem:[#allocation22_spill] sm:$0xff] }
 0x113   : > { %689 = vst [vmem:[%s1268_s16 + $0x140] sm:$0xff] %v625_v58  ;;  %v630_v58 = vmul.f32 %v1363_v27, %v1575_v1 }
 0x114   : > { %691 = vst [vmem:[%s1268_s16 + $0x150] sm:$0xff] %v627_v20  ;;  %v1576_v20 = vld [vmem:[#allocation23_spill] sm:$0xff] }
 0x115   : > { %693 = vst [vmem:[%s1268_s16 + $0x160] sm:$0xff] %v629_v22  ;;  %v632_v22 = vmul.f32 %v1363_v27, %v1576_v20 }
 0x116   : > { %695 = vst [vmem:[%s1268_s16 + $0x170] sm:$0xff] %v631_v39  ;;  %v634_v39 = vmul.f32 %v1363_v27, %v1577_v34 }
 0x117   : > { %697 = vst [vmem:[%s1268_s16 + $0x180] sm:$0xff] %v633_v54  ;;  %v636_v54 = vmul.f32 %v1363_v27, %v1578_v62 }
 0x118   : > { %699 = vst [vmem:[%s1268_s16 + $0x190] sm:$0xff] %v635_v3  ;;  %v638_v3 = vmul.f32 %v1363_v27, %v1579_v50 }
 0x119   : > { %701 = vst [vmem:[%s1268_s16 + $0x1a0] sm:$0xff] %v637_v52  ;;  %v1580_v52 = vld [vmem:[#allocation15_spill] sm:$0xff] }
 0x11a   : > { %703 = vst [vmem:[%s1268_s16 + $0x1b0] sm:$0xff] %v639_v38  ;;  %v640_v31 = vmul.f32 %v1363_v27, %v1580_v52  ;;  %v1581_v38 = vld [vmem:[#allocation10_spill] sm:$0xff] }
 0x11b   : > { %705 = vst [vmem:[%s1268_s16 + $0x1c0] sm:$0xff] %v641_v40  ;;  %v642_v16 = vmul.f32 %v1363_v27, %v1581_v38  ;;  %v1582_v40 = vld [vmem:[#allocation11_spill] sm:$0xff] }
 0x11c   : > { %707 = vst [vmem:[%s1268_s16 + $0x1d0] sm:$0xff] %v643_v19  ;;  %v644_v19 = vmul.f32 %v1363_v27, %v1582_v40 }
 0x11d   : > { %709 = vst [vmem:[%s1268_s16 + $0x1e0] sm:$0xff] %v645_v28  ;;  %v1583_v28 = vld [vmem:[#allocation6_spill] sm:$0xff] }
 0x11e   : > { %711 = vst [vmem:[%s1268_s16 + $0x1f0] sm:$0xff] %v647_v6  ;;  %v646_v33 = vmul.f32 %v1363_v27, %v1583_v28  ;;  %v1584_v6 = vld [vmem:[#allocation7_spill] sm:$0xff] }
 0x11f   : > { %650 = vst [vmem:[%s1268_s16 + $0x8] sm:$0xff] %v586_v32  ;;  %v648_v14 = vmul.f32 %v1363_v27, %v1584_v6 }
 0x120   : > { %652 = vst [vmem:[%s1268_s16 + $0x18] sm:$0xff] %v588_v35 }
 0x121   : > { %654 = vst [vmem:[%s1268_s16 + $0x28] sm:$0xff] %v590_v2 }
 0x122   : > { %656 = vst [vmem:[%s1268_s16 + $0x38] sm:$0xff] %v592_v51 }
 0x123   : > { %658 = vst [vmem:[%s1268_s16 + $0x48] sm:$0xff] %v594_v12 }
 0x124   : > { %660 = vst [vmem:[%s1268_s16 + $0x58] sm:$0xff] %v596_v7 }
 0x125   : > { %662 = vst [vmem:[%s1268_s16 + $0x68] sm:$0xff] %v598_v42 }
 0x126   : > { %664 = vst [vmem:[%s1268_s16 + $0x78] sm:$0xff] %v600_v41 }
 0x127   : > { %666 = vst [vmem:[%s1268_s16 + $0x88] sm:$0xff] %v602_v45 }
 0x128   : > { %668 = vst [vmem:[%s1268_s16 + $0x98] sm:$0xff] %v604_v53 }
 0x129   : > { %670 = vst [vmem:[%s1268_s16 + $0xa8] sm:$0xff] %v606_v46 }
 0x12a   : > { %672 = vst [vmem:[%s1268_s16 + $0xb8] sm:$0xff] %v608_v25 }
 0x12b   : > { %674 = vst [vmem:[%s1268_s16 + $0xc8] sm:$0xff] %v610_v59 }
 0x12c   : > { %676 = vst [vmem:[%s1268_s16 + $0xd8] sm:$0xff] %v612_v9 }
 0x12d   : > { %678 = vst [vmem:[%s1268_s16 + $0xe8] sm:$0xff] %v614_v17 }
 0x12e   : > { %680 = vst [vmem:[%s1268_s16 + $0xf8] sm:$0xff] %v616_v61 }
 0x12f   : > { %682 = vst [vmem:[%s1268_s16 + $0x108] sm:$0xff] %v618_v30 }
 0x130   : > { %684 = vst [vmem:[%s1268_s16 + $0x118] sm:$0xff] %v620_v36 }
 0x131   : > { %686 = vst [vmem:[%s1268_s16 + $0x128] sm:$0xff] %v622_v23 }
 0x132   : > { %688 = vst [vmem:[%s1268_s16 + $0x138] sm:$0xff] %v624_v24 }
 0x133   : > { %690 = vst [vmem:[%s1268_s16 + $0x148] sm:$0xff] %v626_v13 }
 0x134   : > { %692 = vst [vmem:[%s1268_s16 + $0x158] sm:$0xff] %v628_v5 }
 0x135   : > { %694 = vst [vmem:[%s1268_s16 + $0x168] sm:$0xff] %v630_v58 }
 0x136   : > { %696 = vst [vmem:[%s1268_s16 + $0x178] sm:$0xff] %v632_v22 }
 0x137   : > { %698 = vst [vmem:[%s1268_s16 + $0x188] sm:$0xff] %v634_v39 }
 0x138   : > { %700 = vst [vmem:[%s1268_s16 + $0x198] sm:$0xff] %v636_v54 }
 0x139   : > { %702 = vst [vmem:[%s1268_s16 + $0x1a8] sm:$0xff] %v638_v3 }
 0x13a   : > { %704 = vst [vmem:[%s1268_s16 + $0x1b8] sm:$0xff] %v640_v31 }
 0x13b   : > { %706 = vst [vmem:[%s1268_s16 + $0x1c8] sm:$0xff] %v642_v16 }
 0x13c   : > { %708 = vst [vmem:[%s1268_s16 + $0x1d8] sm:$0xff] %v644_v19 }
 0x13d   : > { %710 = vst [vmem:[%s1268_s16 + $0x1e8] sm:$0xff] %v646_v33 }
 0x13e   : > { %712 = vst [vmem:[%s1268_s16 + $0x1f8] sm:$0xff] %v648_v14 }
 0x13f PF: > { %s16_s22 = sadd.s32 1, %s893_s22   ;;  %s1585_s20 = smov %s889_s21 }
 0x140   : > { %p13_p5 = scmp.ge.s32.totalorder %s16_s22, 4   ;;  %s1586_s21 = smov %s1588_s4 }
 0x142   :  { %15 = sbr.rel (!%p13_p5) target bundleno = 2 (0x2), region = 70 }

</bundles_post_ra>
